<compile_context>
chip_gen: v7x
topology: tpu7x:2x2x1
jax: 0.10.0
libtpu: 0.0.40
codegen_flags: <defaults>
</compile_context>

<pallas_src>
from functools import partial

import jax
import jax.numpy as jnp
from jax.experimental import pallas as pl
from jax.experimental.pallas import tpu as pltpu


def skconv_kernel(x1_ref, x2_ref, w1t_ref, bias_ref, wdiff_ref, o_ref, *, inv_hw):
    # Global average pool of U = x1 + x2 without materializing U:
    # one lane reduction per (batch, channel) row.
    s = (jnp.sum(x1_ref[...].astype(jnp.float32), axis=-1)
         + jnp.sum(x2_ref[...].astype(jnp.float32), axis=-1)) * inv_hw   # (bt, C)

    # fc1 (inference BN folded into weight / bias) + ReLU, batched over bt.
    z = jnp.maximum(
        jnp.dot(s, w1t_ref[...], preferred_element_type=jnp.float32)
        + bias_ref[...], 0.0)                                            # (bt, d)

    # fc2 + softmax over M=2 folded into one matmul + sigmoid:
    # a = softmax([la, lb])[0] = sigmoid(la - lb) = sigmoid(z @ (w2_a - w2_b)^T)
    logit = jnp.dot(z, wdiff_ref[...], preferred_element_type=jnp.float32)  # (bt, C)
    a = 1.0 / (1.0 + jnp.exp(-logit))
    wa = a[:, :, None]                                                   # (bt, C, 1)

    # Re-read the streamed tiles here (short live ranges, no spills) and
    # combine in FMA form: out = x2 + a * (x1 - x2)  ==  a*x1 + (1-a)*x2.
    # TODO(synk): for bf16 inputs on v6e/v7x the combine could stay in bf16
    # (halves vreg pressure); kept in f32 here so it is also optimal on v5e.
    x1 = x1_ref[...].astype(jnp.float32)
    x2 = x2_ref[...].astype(jnp.float32)
    o_ref[...] = (x2 + wa * (x1 - x2)).astype(o_ref.dtype)


def _select_vmem_budget():
    """Per-generation (streaming budget, vmem_limit_bytes)."""
    kind = ""
    try:
        kind = jax.devices()[0].device_kind.lower()
    except Exception:
        pass
    cap = 0
    try:
        cap = int(getattr(pltpu.get_tpu_info(), "vmem_capacity_bytes", 0) or 0)
    except Exception:
        cap = 0
    # v5e / v6e have 128 MiB VMEM per core; v7x only 64 MiB per TensorCore.
    if "v7" in kind or (cap and cap <= (96 << 20)):
        budget, limit = 36 << 20, 48 << 20          # v7x (or similarly small)
    elif "v5" in kind or "v6" in kind or cap >= (100 << 20):
        budget, limit = 88 << 20, 108 << 20         # v5e / v6e
    else:
        budget, limit = 36 << 20, 48 << 20          # unknown -> conservative
    if cap:
        limit = min(limit, int(cap * 0.85))
        budget = min(budget, int(cap * 0.60))
    return budget, limit


def skconv_forward(x1, x2, w1, bn_gamma, bn_beta, bn_mean, bn_var, w2,
                   eps=1e-5, block_batch=None):
    """x1, x2: (B, C, H, W) NCHW.  w1: (d, C).  w2: (M*C, d), M = 2."""
    B, C, H, W = x1.shape
    d = w1.shape[0]
    HW = H * W
    dtype = x1.dtype
    itemsize = jnp.dtype(dtype).itemsize

    # Fold inference-mode BatchNorm into fc1: scale rows of w1, keep a bias row.
    inv_std = 1.0 / jnp.sqrt(bn_var.astype(jnp.float32) + eps)
    scale = bn_gamma.astype(jnp.float32) * inv_std                        # (d,)
    w1t = (w1.astype(jnp.float32) * scale[:, None]).T                     # (C, d)
    bias_row = (bn_beta.astype(jnp.float32)
                - bn_mean.astype(jnp.float32) * scale)[None, :]           # (1, d)
    # Fold fc2 + softmax(M=2) into one matrix: logit = z @ (w2_a - w2_b)^T.
    w2f = w2.astype(jnp.float32)
    wdiff = (w2f[:C] - w2f[C:2 * C]).T                                    # (d, C)

    # Batch elements per grid step from a per-chip VMEM budget.
    budget, vmem_limit = _select_vmem_budget()
    if block_batch is not None:
        bt = max(1, min(int(block_batch), B))
    else:
        per_batch = C * HW * itemsize
        # 3 streamed tensors (x1, x2, out), double-buffered by the pipeline.
        bt = max(1, min(B, budget // (6 * per_batch)))
        if B >= 2:
            # Keep >= 2 grid steps so v7x megacore "parallel" sharding uses
            # both TensorCores (costs at most one extra ~0.35us step elsewhere).
            bt = min(bt, pl.cdiv(B, 2))
    G = pl.cdiv(B, bt)

    x1f = x1.reshape(B, C, HW)
    x2f = x2.reshape(B, C, HW)

    cost = pl.CostEstimate(
        flops=int(5 * B * C * HW + 4 * B * C * d),
        transcendentals=int(B * C),
        bytes_accessed=int(3 * B * C * HW * itemsize + 4 * (2 * C * d + d)),
    )

    out = pl.pallas_call(
        partial(skconv_kernel, inv_hw=1.0 / HW),
        out_shape=jax.ShapeDtypeStruct((B, C, HW), dtype),
        grid=(G,),
        in_specs=[
            pl.BlockSpec((bt, C, HW), lambda g: (g, 0, 0)),   # x1 tile
            pl.BlockSpec((bt, C, HW), lambda g: (g, 0, 0)),   # x2 tile
            pl.BlockSpec((C, d), lambda g: (0, 0)),           # fc1^T (BN folded)
            pl.BlockSpec((1, d), lambda g: (0, 0)),           # folded BN bias
            pl.BlockSpec((d, C), lambda g: (0, 0)),           # fc2 (a - b) diff
        ],
        out_specs=pl.BlockSpec((bt, C, HW), lambda g: (g, 0, 0)),
        compiler_params=pltpu.CompilerParams(
            dimension_semantics=("parallel",),
            vmem_limit_bytes=vmem_limit),
        cost_estimate=cost,
    )(x1f, x2f, w1t, bias_row, wdiff)
    return out.reshape(B, C, H, W)


def skconv_reference(x1, x2, w1, bn_gamma, bn_beta, bn_mean, bn_var, w2,
                     eps=1e-5):
    B, C, H, W = x1.shape
    u = x1 + x2
    s = jnp.mean(u, axis=(2, 3))                              # (B, C)
    z = s @ w1.T                                              # (B, d)
    z = (z - bn_mean) / jnp.sqrt(bn_var + eps) * bn_gamma + bn_beta
    z = jnp.maximum(z, 0.0)
    ab = (z @ w2.T).reshape(B, 2, C)                          # (B, M, C)
    ab = jax.nn.softmax(ab, axis=1)
    a = ab[:, 0][:, :, None, None]
    b = ab[:, 1][:, :, None, None]
    return x1 * a + x2 * b


if __name__ == "__main__":
    def run_case(key, B, C, H, W, M=2, r=16, L=32, block_batch=None):
        d = max(C // r, L)
        k1, k2, k3, k4, k5, k6, k7 = jax.random.split(key, 7)
        x1 = jax.random.normal(k1, (B, C, H, W), jnp.float32)
        x2 = jax.random.normal(k2, (B, C, H, W), jnp.float32)
        # Synthetic parameters with shapes matching the PyTorch module.
        w1 = 0.1 * jax.random.normal(k3, (d, C), jnp.float32)       # fc1 1x1 conv
        w2 = 0.1 * jax.random.normal(k4, (M * C, d), jnp.float32)   # fc2 1x1 conv
        bn_gamma = 1.0 + 0.1 * jax.random.normal(k5, (d,), jnp.float32)
        bn_beta = 0.1 * jax.random.normal(k6, (d,), jnp.float32)
        bn_mean = 0.05 * jax.random.normal(k7, (d,), jnp.float32)
        bn_var = 0.9 * jnp.ones((d,), jnp.float32)

        out = skconv_forward(x1, x2, w1, bn_gamma, bn_beta, bn_mean, bn_var, w2,
                             block_batch=block_batch)
        out = jax.block_until_ready(out)
        ref = skconv_reference(x1, x2, w1, bn_gamma, bn_beta, bn_mean, bn_var, w2)
        assert out.shape == (B, C, H, W)
        assert jnp.allclose(out, ref, atol=1e-4, rtol=1e-4), "mismatch vs reference"

    key = jax.random.PRNGKey(0)
    k_a, k_b = jax.random.split(key)
    # Spec-consistent small case: bt=1, G=2 (both v7x TensorCores get a step).
    run_case(k_a, B=2, C=4, H=16, W=16)
    # Ragged grid: B=3, bt=2 -> partial last block; unaligned C and HW.
    run_case(k_b, B=3, C=6, H=12, W=12)

    print("KERNEL_OK")
</pallas_src>

<mosaic_0001>
module attributes {stable_mosaic.version = 11 : i64} {
  func.func @skconv_kernel(%arg0: i32, %arg1: memref<1x4x256xf32, #tpu.memory_space<vmem>>, %arg2: memref<1x4x256xf32, #tpu.memory_space<vmem>>, %arg3: memref<4x32xf32, #tpu.memory_space<vmem>>, %arg4: memref<1x32xf32, #tpu.memory_space<vmem>>, %arg5: memref<32x4xf32, #tpu.memory_space<vmem>>, %arg6: memref<1x4x256xf32, #tpu.memory_space<vmem>>) attributes {dimension_semantics = [#tpu.dimension_semantics<parallel>], iteration_bounds = array<i64: 2>, scalar_prefetch = 0 : i64, scratch_operands = 0 : i64, tpu.core_type = #tpu.core_type<tc>, window_params = [{transform_indices = @transform_0, window_bounds = array<i64: 1, 4, 256>}, {transform_indices = @transform_1, window_bounds = array<i64: 1, 4, 256>}, {pipeline_mode = #tpu.pipeline_mode<synchronous>, transform_indices = @transform_2, window_bounds = array<i64: 4, 32>}, {pipeline_mode = #tpu.pipeline_mode<synchronous>, transform_indices = @transform_3, window_bounds = array<i64: 1, 32>}, {pipeline_mode = #tpu.pipeline_mode<synchronous>, transform_indices = @transform_4, window_bounds = array<i64: 32, 4>}, {transform_indices = @transform_5, window_bounds = array<i64: 1, 4, 256>}]} {
    %c0 = arith.constant 0 : index
    %c0_0 = arith.constant 0 : index
    %c0_1 = arith.constant 0 : index
    %0 = vector.load %arg1[%c0, %c0_0, %c0_1] : memref<1x4x256xf32, #tpu.memory_space<vmem>>, vector<1x4x256xf32>
    %cst = arith.constant dense<0.000000e+00> : vector<1x4xf32>
    %1 = vector.multi_reduction <add>, %0, %cst [2] : vector<1x4x256xf32> to vector<1x4xf32>
    %c0_2 = arith.constant 0 : index
    %c0_3 = arith.constant 0 : index
    %c0_4 = arith.constant 0 : index
    %2 = vector.load %arg2[%c0_2, %c0_3, %c0_4] : memref<1x4x256xf32, #tpu.memory_space<vmem>>, vector<1x4x256xf32>
    %cst_5 = arith.constant dense<0.000000e+00> : vector<1x4xf32>
    %3 = vector.multi_reduction <add>, %2, %cst_5 [2] : vector<1x4x256xf32> to vector<1x4xf32>
    %4 = arith.addf %1, %3 : vector<1x4xf32>
    %cst_6 = arith.constant 3.906250e-03 : f32
    %5 = vector.broadcast %cst_6 : f32 to vector<1x4xf32>
    %6 = arith.mulf %4, %5 : vector<1x4xf32>
    %c0_7 = arith.constant 0 : index
    %c0_8 = arith.constant 0 : index
    %7 = vector.load %arg3[%c0_7, %c0_8] : memref<4x32xf32, #tpu.memory_space<vmem>>, vector<4x32xf32>
    %cst_9 = arith.constant dense<0.000000e+00> : vector<1x32xf32>
    %8 = tpu.matmul %6, %7, %cst_9 {dimension_numbers = #tpu.dot_dimension_numbers<[1], [0], [0], [1], [0, 0, 1, 1], [], []>} : vector<1x4xf32>, vector<4x32xf32>, vector<1x32xf32> -> vector<1x32xf32>
    %c0_10 = arith.constant 0 : index
    %c0_11 = arith.constant 0 : index
    %9 = vector.load %arg4[%c0_10, %c0_11] : memref<1x32xf32, #tpu.memory_space<vmem>>, vector<1x32xf32>
    %10 = arith.addf %8, %9 : vector<1x32xf32>
    %cst_12 = arith.constant 0.000000e+00 : f32
    %11 = vector.broadcast %cst_12 : f32 to vector<1x32xf32>
    %12 = arith.maximumf %10, %11 : vector<1x32xf32>
    %c0_13 = arith.constant 0 : index
    %c0_14 = arith.constant 0 : index
    %13 = vector.load %arg5[%c0_13, %c0_14] : memref<32x4xf32, #tpu.memory_space<vmem>>, vector<32x4xf32>
    %cst_15 = arith.constant dense<0.000000e+00> : vector<1x4xf32>
    %14 = tpu.matmul %12, %13, %cst_15 {dimension_numbers = #tpu.dot_dimension_numbers<[1], [0], [0], [1], [0, 0, 1, 1], [], []>} : vector<1x32xf32>, vector<32x4xf32>, vector<1x4xf32> -> vector<1x4xf32>
    %cst_16 = arith.constant 0.000000e+00 : f32
    %15 = vector.broadcast %cst_16 : f32 to vector<1x4xf32>
    %16 = arith.subf %15, %14 : vector<1x4xf32>
    %17 = math.exp %16 : vector<1x4xf32>
    %cst_17 = arith.constant 1.000000e+00 : f32
    %18 = vector.broadcast %cst_17 : f32 to vector<1x4xf32>
    %19 = arith.addf %18, %17 : vector<1x4xf32>
    %cst_18 = arith.constant 1.000000e+00 : f32
    %20 = vector.broadcast %cst_18 : f32 to vector<1x4xf32>
    %21 = arith.divf %20, %19 : vector<1x4xf32>
    %22 = vector.shape_cast %21 : vector<1x4xf32> to vector<1x4x1xf32>
    %c0_19 = arith.constant 0 : index
    %c0_20 = arith.constant 0 : index
    %c0_21 = arith.constant 0 : index
    %23 = vector.load %arg1[%c0_19, %c0_20, %c0_21] : memref<1x4x256xf32, #tpu.memory_space<vmem>>, vector<1x4x256xf32>
    %c0_22 = arith.constant 0 : index
    %c0_23 = arith.constant 0 : index
    %c0_24 = arith.constant 0 : index
    %24 = vector.load %arg2[%c0_22, %c0_23, %c0_24] : memref<1x4x256xf32, #tpu.memory_space<vmem>>, vector<1x4x256xf32>
    %25 = arith.subf %23, %24 : vector<1x4x256xf32>
    %26 = vector.broadcast %22 : vector<1x4x1xf32> to vector<1x4x256xf32>
    %27 = arith.mulf %26, %25 : vector<1x4x256xf32>
    %28 = arith.addf %24, %27 : vector<1x4x256xf32>
    %c0_25 = arith.constant 0 : index
    %c0_26 = arith.constant 0 : index
    %c0_27 = arith.constant 0 : index
    %29 = vector.load %arg6[%c0_25, %c0_26, %c0_27] : memref<1x4x256xf32, #tpu.memory_space<vmem>>, vector<1x4x256xf32>
    tpu.vector_store %arg6[%c0_25, %c0_26, %c0_27], %28 {strides = array<i32>} : memref<1x4x256xf32, #tpu.memory_space<vmem>>, vector<1x4x256xf32>,
    return
  }
  func.func @transform_0(%arg0: i32) -> (i32, i32, i32) {
    %c0_i32 = arith.constant 0 : i32
    %c0_i32_0 = arith.constant 0 : i32
    %c0_i32_1 = arith.constant 0 : i32
    return %arg0, %c0_i32, %c0_i32_0 : i32, i32, i32
  }
  func.func @transform_1(%arg0: i32) -> (i32, i32, i32) {
    %c0_i32 = arith.constant 0 : i32
    %c0_i32_0 = arith.constant 0 : i32
    %c0_i32_1 = arith.constant 0 : i32
    return %arg0, %c0_i32, %c0_i32_0 : i32, i32, i32
  }
  func.func @transform_2(%arg0: i32) -> (i32, i32) {
    %c0_i32 = arith.constant 0 : i32
    %c0_i32_0 = arith.constant 0 : i32
    %c0_i32_1 = arith.constant 0 : i32
    return %c0_i32, %c0_i32_0 : i32, i32
  }
  func.func @transform_3(%arg0: i32) -> (i32, i32) {
    %c0_i32 = arith.constant 0 : i32
    %c0_i32_0 = arith.constant 0 : i32
    %c0_i32_1 = arith.constant 0 : i32
    return %c0_i32, %c0_i32_0 : i32, i32
  }
  func.func @transform_4(%arg0: i32) -> (i32, i32) {
    %c0_i32 = arith.constant 0 : i32
    %c0_i32_0 = arith.constant 0 : i32
    %c0_i32_1 = arith.constant 0 : i32
    return %c0_i32, %c0_i32_0 : i32, i32
  }
  func.func @transform_5(%arg0: i32) -> (i32, i32, i32) {
    %c0_i32 = arith.constant 0 : i32
    %c0_i32_0 = arith.constant 0 : i32
    %c0_i32_1 = arith.constant 0 : i32
    return %arg0, %c0_i32, %c0_i32_0 : i32, i32, i32
  }
}

</mosaic_0001>

<bundles_post_ra>
// kernel: tpu_custom_call.1
= control target key start
LH: loop header
LB: loop body
LE: loop exit
PB: predicated region body
PF: predicated region fallthrough
CT: control target
= control target key end

     0   :  { %10 = vsyncpa [#allocation3], 0  ;;  %s867_s0 = inlined_call_operand.vmem [shape: f32[2,4,256], index: 0, kind: input, shape index: {}]   ;;  %s868_s1 = inlined_call_operand.vmem [shape: f32[2,4,256], index: 1, kind: input, shape index: {}]   ;;  %s869_s2 = inlined_call_operand.vmem [shape: f32[4,32], index: 2, kind: input, shape index: {}]   ;;  %s870_s3 = inlined_call_operand.vmem [shape: f32[1,32], index: 3, kind: input, shape index: {}]   ;;  %s871_s4 = inlined_call_operand.vmem [shape: f32[32,4], index: 4, kind: input, shape index: {}]   ;;  %s872_s5 = inlined_call_operand.hbm [shape: f32[2,4,256], index: 5, kind: output, shape index: {}]  }
   0x1   :  { %12 = vsyncpa [#allocation3 + $0x1], 0  ;;  %s734_s18 = smov 0   ;;  %s736_s19 = smov 0  }
   0x2   :  { %s738_s20 = smov 0   ;;  %s740_s21 = smov 0  }
   0x3 LB: > { %s755_s22 = sadd.s32 4294967295, %s698_s21   ;;  %s539_s23 = sadd.s32 4294967294, %s698_s21   ;;  %s698_s21 = sphi %s740_s21, %s878_s21   ;;  %s694_s20 = sphi %s738_s20, %s877_s20   ;;  %s690_s19 = sphi %s736_s19, %s876_s19   ;;  %s686_s18 = sphi %s734_s18, %s875_s18  }
   0x4   : > { %s759_s24 = sadd.s32 1, %s698_s21   ;;  %s140_s25 = sadd.s32 1, %s694_s20 }
   0x5   : > { %s137_s26 = ssub.s32 %s698_s21, %s759_s24  ;;  %p150_p0 = scmp.ne.s32.totalorder %s694_s20, %s690_s19 }
   0x6   : > { %p138_p1 = scmp.eq.s32.totalorder %s137_s26, 0  ;;  %p151_p2 = scmp.eq.s32.totalorder %s755_s22, 1 }
   0x7   : > { %p156_p3 = scmp.ne.s32.totalorder %s690_s19, %s686_s18  ;;  %p157_p4 = scmp.eq.s32.totalorder %s539_s23, 1 }
   0x8   : > { %s770_s27 = scalar_select %p138_p1, %s694_s20, %s140_s25  }
   0x9   : > { %p772_p5 = por %p151_p2, %p150_p0  ;;  %p776_p6 = por %p157_p4, %p156_p3 }
   0xa   : > { %p542_p7 = scmp.ge.s32.totalorder %s698_s21, 1  ;;  %p200_p8 = scmp.lt.s32.totalorder %s698_s21, 3 }
   0xc   : > { %p201_p9 = pnand %p542_p7, %p200_p8 }
   0xd   : > { %p233_p10 = scmp.lt.s32.totalorder (!%p201_p9), %s755_s22, 1  ;;  %vm247_vm0 = vcmask (!%p201_p9), 1043456   ;;  %v700_v10 = vmov (!%p201_p9), 0.0   ;;  %v264_v11 = vld [vmem:[%s869_s2] sm:$0xf] (!%p201_p9)  ;;  %vm701_vm1 = vmmov (!%p201_p9), 0   ;;  %v267_v16 = vlaneseq (!%p201_p9) }
   0xe   : > { %204 = sbr.rel (%p201_p9) target bundleno = 776 (0x308), region = 40  ;;  %566 = vmatprep.subr.mxu0 (!%p201_p9), %v700_v10  ;;  %568 = vmatprep.mubr.msk.f32.mxu0 (!%p201_p9), %vm701_vm1, %v700_v10  ;;  %v350_v12 = vld [vmem:[%s871_s4] sm:$0xff] (!%p201_p9)  ;;  %v351_v13 = vld [vmem:[%s871_s4 + $0x8] sm:$0xff] (!%p201_p9)  ;;  %v702_v14 = vmov (!%p201_p9), 0.0|0.0   ;;  %vm273_vm2 = vcmask (!%p201_p9), 31744   ;;  %v352_v25 = vld [vmem:[%s871_s4 + $0x10] sm:$0xff] (!%p201_p9) }
   0xf   : > { %567 = vmatpush3.msk.msra.mxu0 (!%p201_p9), %vm247_vm0, %v264_v11  ;;  %579 = vmatprep.mubr.msk.f32.mxu1 (!%p201_p9), %vm701_vm1, %v700_v10  ;;  %v583_v15 = vpack.c.bf16 (!%p201_p9), %v351_v13, %v350_v12  ;;  %v268_v18 = vand.u32 (!%p201_p9), 127, %v267_v16  ;;  %v270_v19 = vshrl.u32 (!%p201_p9), %v267_v16, 7  ;;  %v353_v26 = vld [vmem:[%s871_s4 + $0x18] sm:$0xff] (!%p201_p9)  ;;  %v265_v28 = vld [vmem:[%s870_s3] sm:$0x1] (!%p201_p9)  ;;  %vm354_vm3 = vcmask (!%p201_p9), 261120  }
  0x10   : > { %582 = vmatprep.subr.bf16.mxu1 (!%p201_p9), %v702_v14  ;;  %v586_v27 = vpack.c.bf16 (!%p201_p9), %v353_v26, %v352_v25  ;;  %s558_s11 = sshll.u32 (!%p201_p9), %s755_s22, 7 }
  0x11   : > { %584 = vmatpush3.bf16.msra.mxu1 (!%p201_p9), %v583_v15  ;;  %v271_v21 = vsub.s32 (!%p201_p9), %v268_v18, %v270_v19  ;;  %v436_v39 = vsub.s32 (!%p201_p9), 0, %v270_v19  ;;  %s825_s16 = scalar_lea.hbm (!%p201_p9), %s872_s5, %s558_s11 }
  0x12   : > { %585 = vmatprep.subr.bf16.mxu1 (!%p201_p9), %v702_v14 }
  0x15   : > { %s234_s30 = scalar_select %p233_p10, %s755_s22, 1  ;;  %587 = vmatpush3.bf16.msra.mxu1 %v586_v27 }
  0x16   : > { %s703_s22 = smov [#allocation2]  }
  0x17   : > { %s556_s6 = sshll.u32 %s234_s30, 3  ;;  %s640_s25 = sshll.u32 %s703_s22, 4  ;;  %s641_s25 = int_to_ptr.vmem [resolvable:$false] %s640_s25 }
  0x18   : > { %s237_s9 = scalar_lea.vmem %s867_s0, %s556_s6  ;;  %s242_s12 = scalar_lea.vmem %s868_s1, %s556_s6 }
  0x19   : > { %v243_v0 = vld [vmem:[%s237_s9] sm:$0xff]  ;;  %s230_s9 = sand.u32 1, %s690_s19   ;;  %s642_s26 = scalar_lea.vmem %s641_s25, 256 }
  0x1a   : > { %v790_v1 = vld [vmem:[%s242_s12] sm:$0xff]  ;;  %v245_v2 = vcombine.high %v243_v0, %v243_v0  ;;  %v248_v3 = vsel %vm247_vm0, %v243_v0, 0.0  ;;  %s543_s10 = sshll.u32 %s230_s9, 3  ;;  %s454_s17 = scalar_lea.sflag [#allocation3], %s230_s9 }
  0x1b   : > { %v255_v4 = vcombine.high %v790_v1, %v790_v1  ;;  %v257_v6 = vsel %vm247_vm0, %v790_v1, 0.0  ;;  %v441_v42 = vsub.f32 %v243_v0, %v790_v1  ;;  %s232_s12 = scalar_lea.vmem [#allocation2], %s543_s10 }
  0x1c   : > { %v249_v5 = vsel %vm247_vm0, %v245_v2, 0.0  ;;  %s468_s13 = sshll.u32 %s232_s12, 4  ;;  %s827_s13 = int_to_ptr.vmem [resolvable:$true] %s468_s13 }
  0x1d   : > { %v258_v7 = vsel %vm247_vm0, %v255_v4, 0.0  ;;  %v250_v8 = vadd.f32 %v249_v5, %v248_v3  ;;  %v443_v43 = vcombine.high %v441_v42, %v441_v42  ;;  %s636_s23 = scalar_lea.vmem %s827_s13, 128  ;;  %p643_p0 = scmp.lt.s32.totalorder %s827_s13, %s641_s25 }
  0x1e   : > { %v259_v9 = vadd.f32 %v258_v7, %v257_v6  ;;  %p637_p11 = scmp.ne.s32.totalorder %s827_s13, %s636_s23  ;;  %p644_p1 = scmp.lt.s32.totalorder %s642_s26, %s636_s23 }
  0x1f   : > { %251 = vadd.xlane.f32.xlu0 %v250_v8 }
  0x20   : > { %p638_p12 = pnand %p637_p11, %p772_p5  ;;  %p645_p2 = por %p644_p1, %p643_p0 }
  0x22   : > { %p639_p13 = pneg %p638_p12 }
  0x23   : > { %260 = vadd.xlane.f32.xlu0 %v259_v9 }
  0x24   : > { %p646_p3 = pnand %p645_p2, %p639_p13 }
  0xac   : > { %v252_v17 = vpop.xlane.xlu0 %251 }
  0xb0   : > { %v261_v20 = vpop.xlane.xlu0 %260 }
  0xb1   : > { %v262_v22 = vadd.f32 %v261_v20, %v252_v17 }
  0xb3   : > { %v263_v23 = vmul.f32 0.00390625, %v262_v22 }
  0xb5   : > { %v272_v24 = vrot.slane %v263_v23, %v271_v21 }
  0xb7   : > { %569 = vmatmul.mubr.msk.f32.vlgmr.msra.gmra.mrb[0].mxu0 %vm273_vm2, %v272_v24 }
 0x18a   : > { %v345_v29 = vpop.f32.mrb[0].mxu0 }
 0x18b   : > { %v346_v30 = vadd.f32 %v345_v29, %v265_v28  ;;  %v570_v31 = vpop.f32.mrb[1].mxu0 }
 0x18d   : > { %v349_v32 = vmax.f32 %v346_v30, 0.0 }
 0x18f   : > { %580 = vmatmul.mubr.msk.f32.vlgmr.msra.gmra.mrb[0].mxu1 %vm354_vm3, %v349_v32 }
 0x262   : > { %v424_v33 = vpop.f32.mrb[0].mxu1 }
 0x263   : > { %v428_v34 = vsub.f32 0.0, %v424_v33  ;;  %v581_v35 = vpop.f32.mrb[1].mxu1 }
 0x265   : > { %v429_v36 = vmul.f32 1.442695, %v428_v34 }
 0x267   : > { %632 = vpow2.f32 %v429_v36 }
 0x271   : > { %v633_v37 = vpop.eup %632 }
 0x272   : > { %v431_v38 = vadd.f32 1.0, %v633_v37 }
 0x274   : > { %634 = vrcp.f32 %v431_v38 }
 0x27e   : > { %v635_v40 = vpop.eup %634 }
 0x27f   : > { %v437_v41 = vrot.slane %v635_v40, %v436_v39 }
 0x281   : > { %439 = vbcast.lane.b32.xlu1 %v437_v41, 256 }
 0x2f3   : > { %v440_v44 = vpop.permute.xlu1 %439 }
 0x2f4   : > { %v445_v45 = vmul.f32 %v441_v42, %v440_v44  ;;  %v446_v46 = vmul.f32 %v443_v43, %v440_v44 }
 0x2f6   : > { %v449_v47 = vcombine.low %v445_v45, %v446_v46 }
 0x2f8   : > { %v451_v48 = vadd.f32 %v449_v47, %v790_v1 }
 0x2fa   : > { %452 = vst [vmem:[%s232_s12] sm:$0xff] %v451_v48 }
 0x2fb   : > { %649 = shalt.err (!%p646_p3)
}
 0x2fc   : > { %s650_s30 = scalar_lea.hbm %s825_s16, 128  ;;  %s654_s8 = scalar_lea.hbm %s872_s5, 256 }
 0x2fd   : > { %p651_p4 = scmp.ne.s32.totalorder %s825_s16, %s650_s30  ;;  %p655_p9 = scmp.lt.u32.totalorder %s825_s16, %s872_s5 }
 0x2fe   : > { %p656_p10 = scmp.lt.u32.totalorder %s654_s8, %s650_s30  ;;  %p658_p12 = scmp.lt.u32.totalorder %s650_s30, %s825_s16 }
 0x2ff   : > { %p652_p7 = pnand %p651_p4, %p772_p5 }
 0x300   : > { %p657_p11 = por %p656_p10, %p655_p9 }
 0x301   : > { %p653_p8 = pneg %p652_p7 }
 0x302   : > { %p659_p13 = por %p658_p12, %p657_p11 }
 0x304   : > { %p660_p0 = pnand %p659_p13, %p653_p8 }
 0x306   : > { %663 = shalt.err (!%p660_p0)
}
 0x307   : > { %588 = dma.vmem_to_hbm [thread:$0]  (%p772_p5), %s827_s13, 128, %s825_s16, %s454_s17  }
 0x308 PF: > { %p594_p1 = scmp.ge.s32.totalorder %s698_s21, 2  ;;  %s480_s11 = sand.u32 1, %s686_s18  }
 0x309   : > { %s481_s12 = scalar_lea.sflag [#allocation3], %s480_s11 }
 0x30a   : > { %p591_p2 = pnand %p594_p1, %p776_p6 }
 0x30c   : > { %681 = dma.done.wait (!%p591_p2), %s481_s12, 128  }
 0x30d   : > { %683 = vsyncadd (!%p591_p2), %s481_s12, 4294967168  ;;  %p15_p3 = scmp.ge.s32.totalorder %s759_s24, 4   ;;  %s875_s18 = smov %s690_s19 }
 0x30e   : > { %s876_s19 = smov %s694_s20  ;;  %s877_s20 = smov %s770_s27 }
 0x30f   : > { %s878_s21 = smov %s759_s24  ;;  %17 = sbr.rel (!%p15_p3) target bundleno = 3 (0x3), region = 78 }
 0x316   :  { %486 = vsyncpa [#allocation3], 1 }
 0x317   :  { %488 = vsyncpa [#allocation3 + $0x1], 1 }

</bundles_post_ra>
